<compile_context>
chip_gen: v6e
topology: v6e:2x2x1
jax: 0.10.0
libtpu: 0.0.40
codegen_flags: <defaults>
</compile_context>

<pallas_src>
import math
import jax
import jax.numpy as jnp
from jax.experimental import pallas as pl
from jax.experimental.pallas import tpu as pltpu


def _round_up(v, m):
    return (v + m - 1) // m * m


def _gcn_kernel(x_ref, adj_ref, w_ref, b_ref, o_ref, acc_ref):
    # Grid step (b, i, k):
    #   x_ref:   (1, tk, Fin)       node-row tile k of x for batch b
    #   adj_ref: (1, tm, tk)        adjacency tile (output rows i, contraction k)
    #   w_ref:   (Fin, Fout_pad)    resident weights
    #   b_ref:   (1, Fout_pad)      resident bias (f32)
    #   o_ref:   (1, tm, Fout_pad)  output tile, written once at k == last
    #   acc_ref: (tm, Fout_pad) f32 VMEM accumulator, persists across k
    k = pl.program_id(2)

    @pl.when(k == 0)
    def _():
        acc_ref[...] = jnp.zeros_like(acc_ref)

    # Fused two-matmul: the support tile never leaves VMEM.
    support = jnp.dot(x_ref[0], w_ref[...], preferred_element_type=jnp.float32)
    acc_ref[...] += jnp.dot(
        adj_ref[0],
        support.astype(adj_ref.dtype),          # keep MXU in bf16 when enabled
        preferred_element_type=jnp.float32,
    )

    @pl.when(k == pl.num_programs(2) - 1)
    def _():
        o_ref[0] = (acc_ref[...] + b_ref[...]).astype(o_ref.dtype)


def graph_convolution(x, adj, weight, bias, *,
                      compute_dtype=jnp.bfloat16, tm=256, tk=512):
    """Pallas implementation of GraphConvolution.forward (dense graph path).

    x:      [B, N, Fin] or [N, Fin]
    adj:    [N, N], [1, N, N] (shared) or [B, N, N] (dense)
    weight: [Fin, Fout]
    bias:   [Fout] or None
    compute_dtype: matmul input dtype (bf16 default; accumulation is always f32)
    returns [B, N, Fout] float32 (2D x is treated as batch of 1, like unsqueeze(0))
    """
    if x.ndim == 2:
        x = x[None]
    if x.ndim != 3:
        raise ValueError(f"Expected 2D or 3D input tensor, got {x.ndim}D")
    B, N, Fin = x.shape

    if adj.ndim == 2:
        adj3 = adj[None]
    elif adj.ndim == 3:
        adj3 = adj
    else:
        raise ValueError(f"Expected 2D or 3D adjacency matrix, got {adj.ndim}D")
    if adj3.shape[-1] != N or adj3.shape[-2] != N:
        raise ValueError(f"Node dimension mismatch: x has {N} nodes, adj is {adj3.shape}")
    batched_adj = adj3.shape[0] != 1
    if batched_adj and adj3.shape[0] != B:
        raise ValueError(f"Batch size mismatch: adj has {adj3.shape[0]} batches, x has {B}")
    if weight.shape[0] != Fin:
        raise ValueError(f"weight in_features {weight.shape[0]} != x features {Fin}")
    Fout = weight.shape[1]

    # --- tiling / padding (lane-dense last dims; 8/128-aligned tiles) --------
    tm = min(tm, _round_up(N, 8))          # adj / output row tile (sublane mult of 8)
    tk = min(tk, _round_up(N, 128))        # contraction tile (lane mult of 128)
    n_rows = _round_up(N, tm)              # padded output-row extent
    n_kdim = _round_up(N, tk)              # padded contraction extent
    fout_p = _round_up(Fout, 128)          # lane-dense output width

    cd = compute_dtype
    x_p = jnp.pad(x.astype(cd), ((0, 0), (0, n_kdim - N), (0, 0)))
    adj_p = jnp.pad(adj3.astype(cd), ((0, 0), (0, n_rows - N), (0, n_kdim - N)))
    w_p = jnp.pad(weight.astype(cd), ((0, 0), (0, fout_p - Fout)))
    if bias is None:
        b_p = jnp.zeros((1, fout_p), jnp.float32)
    else:
        b_p = jnp.pad(bias.astype(jnp.float32), (0, fout_p - Fout)).reshape(1, fout_p)

    if batched_adj:
        adj_idx = lambda b, i, k: (b, i, k)
    else:
        adj_idx = lambda b, i, k: (0, i, k)

    grid = (B, n_rows // tm, n_kdim // tk)

    out_p = pl.pallas_call(
        _gcn_kernel,
        out_shape=jax.ShapeDtypeStruct((B, n_rows, fout_p), jnp.float32),
        grid_spec=pltpu.PrefetchScalarGridSpec(
            num_scalar_prefetch=0,
            grid=grid,
            in_specs=[
                pl.BlockSpec((1, tk, Fin), lambda b, i, k: (b, k, 0)),
                pl.BlockSpec((1, tm, tk), adj_idx),
                pl.BlockSpec((Fin, fout_p), lambda b, i, k: (0, 0)),
                pl.BlockSpec((1, fout_p), lambda b, i, k: (0, 0)),
            ],
            out_specs=pl.BlockSpec((1, tm, fout_p), lambda b, i, k: (b, i, 0)),
            scratch_shapes=[pltpu.VMEM((tm, fout_p), jnp.float32)],
        ),
        compiler_params=pltpu.CompilerParams(
            # b and i shard across TensorCores (v7x dual-TC / megacore); k is
            # the reduction over the resident accumulator.
            dimension_semantics=("parallel", "parallel", "arbitrary"),
        ),
    )(x_p, adj_p, w_p, b_p)

    out = out_p[:, :N, :Fout]
    # NaN/Inf gate (matches the three PyTorch early-return checks): any
    # nonfinite in x / adj / bias propagates to a nonfinite output element,
    # and a nonfinite output is itself gated, so one check over the output
    # suffices — no second HBM pass over x or adj. jnp.where, not `* flag`,
    # so NaN/Inf really become zeros.
    finite = jnp.isfinite(out).all()
    return jnp.where(finite, out, jnp.zeros_like(out))


def init_params(key, in_features, out_features, bias=True):
    """Deterministic init mirroring the PyTorch module's reset_parameters."""
    kw, kb = jax.random.split(key)
    # kaiming_uniform_(a=sqrt(5)) on a [in, out] 2D tensor:
    #   fan_in (PyTorch convention) = weight.size(1) = out_features
    #   gain = sqrt(2 / (1 + 5)) = sqrt(1/3); bound = gain * sqrt(3 / fan_in)
    fan_in = out_features
    w_bound = math.sqrt(1.0 / fan_in)
    weight = jax.random.uniform(
        kw, (in_features, out_features), jnp.float32, -w_bound, w_bound
    )
    if bias:
        b_bound = 1.0 / math.sqrt(fan_in) if fan_in > 0 else 0.0
        b = jax.random.uniform(kb, (out_features,), jnp.float32, -b_bound, b_bound)
    else:
        b = None
    return weight, b


if __name__ == "__main__":
    key = jax.random.PRNGKey(0)
    k_x, k_adj, k_p = jax.random.split(key, 3)

    B, N, Fin, Fout = 2, 16, 8, 32
    x = jax.random.normal(k_x, (B, N, Fin), jnp.float32)
    adj_raw = jax.random.uniform(k_adj, (N, N), jnp.float32)
    # Row-normalized dense adjacency (typical GCN usage; still a dense matmul).
    adj = adj_raw / jnp.sum(adj_raw, axis=-1, keepdims=True)

    weight, bias = init_params(k_p, Fin, Fout, bias=True)

    ref = jnp.einsum("nm,bmf->bnf", adj, jnp.einsum("bni,io->bno", x, weight)) + bias

    # Exact f32 path.
    out32 = jax.block_until_ready(
        graph_convolution(x, adj, weight, bias, compute_dtype=jnp.float32))
    assert out32.shape == (B, N, Fout)
    assert jnp.allclose(out32, ref, atol=1e-4, rtol=1e-4), "f32 path mismatch"

    # Default bf16-MXU path (f32 accumulation) — looser tolerance.
    out_bf = jax.block_until_ready(graph_convolution(x, adj, weight, bias))
    assert out_bf.shape == (B, N, Fout)
    assert jnp.allclose(out_bf, ref, atol=5e-2, rtol=5e-2), "bf16 path mismatch"

    # NaN/Inf gating: output must be exactly all zeros (not NaN).
    x_bad = x.at[0, 3, 1].set(jnp.nan)
    out_bad = jax.block_until_ready(graph_convolution(x_bad, adj, weight, bias))
    assert jnp.all(out_bad == 0.0), "NaN in x not zeroed"

    adj_bad = adj.at[2, 5].set(jnp.inf)
    out_bad2 = jax.block_until_ready(graph_convolution(x, adj_bad, weight, bias))
    assert jnp.all(out_bad2 == 0.0), "Inf in adj not zeroed"

    # Batched adjacency path.
    adj_t = adj.T / jnp.sum(adj.T, axis=-1, keepdims=True)
    adj_b = jnp.stack([adj, adj_t])
    out_b = jax.block_until_ready(
        graph_convolution(x, adj_b, weight, bias, compute_dtype=jnp.float32))
    ref_b = jnp.einsum("bnm,bmf->bnf", adj_b,
                       jnp.einsum("bni,io->bno", x, weight)) + bias
    assert jnp.allclose(out_b, ref_b, atol=1e-4, rtol=1e-4), "batched-adj mismatch"

    # TODO(synk): sparse-adjacency path (torch.sparse.mm) has no clean Pallas
    # equivalent; only the dense graph_type is implemented.
    print("KERNEL_OK")
</pallas_src>

<mosaic_0001>
module attributes {stable_mosaic.version = 11 : i64} {
  func.func @_gcn_kernel(%arg0: i32, %arg1: i32, %arg2: i32, %arg3: memref<1x128x8xf32, #tpu.memory_space<vmem>>, %arg4: memref<1x16x128xf32, #tpu.memory_space<vmem>>, %arg5: memref<8x128xf32, #tpu.memory_space<vmem>>, %arg6: memref<1x128xf32, #tpu.memory_space<vmem>>, %arg7: memref<1x16x128xf32, #tpu.memory_space<vmem>>, %arg8: memref<16x128xf32, #tpu.memory_space<vmem>>) attributes {dimension_semantics = [#tpu.dimension_semantics<parallel>, #tpu.dimension_semantics<parallel>, #tpu.dimension_semantics<arbitrary>], iteration_bounds = array<i64: 2, 1, 1>, scalar_prefetch = 0 : i64, scratch_operands = 1 : i64, tpu.core_type = #tpu.core_type<tc>, window_params = [{transform_indices = @transform_0, window_bounds = array<i64: 1, 128, 8>}, {transform_indices = @transform_1, window_bounds = array<i64: 1, 16, 128>}, {pipeline_mode = #tpu.pipeline_mode<synchronous>, transform_indices = @transform_2, window_bounds = array<i64: 8, 128>}, {pipeline_mode = #tpu.pipeline_mode<synchronous>, transform_indices = @transform_3, window_bounds = array<i64: 1, 128>}, {transform_indices = @transform_4, window_bounds = array<i64: 1, 16, 128>}]} {
    %c0_i32 = arith.constant 0 : i32
    %0 = arith.cmpi eq, %arg2, %c0_i32 : i32
    %1 = arith.extui %0 : i1 to i32
    %c0_i32_0 = arith.constant 0 : i32
    %2 = arith.cmpi ne, %1, %c0_i32_0 : i32
    scf.if %2 {
      %cst_15 = arith.constant 0.000000e+00 : f32
      %16 = vector.broadcast %cst_15 : f32 to vector<16x128xf32>
      %c0_16 = arith.constant 0 : index
      %c0_17 = arith.constant 0 : index
      %17 = vector.load %arg8[%c0_16, %c0_17] : memref<16x128xf32, #tpu.memory_space<vmem>>, vector<16x128xf32>
      tpu.vector_store %arg8[%c0_16, %c0_17], %16 {strides = array<i32>} : memref<16x128xf32, #tpu.memory_space<vmem>>, vector<16x128xf32>,
    } else {
    }
    %c0 = arith.constant 0 : index
    %c0_1 = arith.constant 0 : index
    %c0_2 = arith.constant 0 : index
    %3 = vector.load %arg3[%c0, %c0_1, %c0_2] : memref<1x128x8xf32, #tpu.memory_space<vmem>>, vector<1x128x8xf32>
    %4 = vector.shape_cast %3 : vector<1x128x8xf32> to vector<128x8xf32>
    %c0_3 = arith.constant 0 : index
    %c0_4 = arith.constant 0 : index
    %5 = vector.load %arg5[%c0_3, %c0_4] : memref<8x128xf32, #tpu.memory_space<vmem>>, vector<8x128xf32>
    %cst = arith.constant dense<0.000000e+00> : vector<128x128xf32>
    %6 = tpu.matmul %4, %5, %cst {dimension_numbers = #tpu.dot_dimension_numbers<[1], [0], [0], [1], [0, 0, 1, 1], [], []>} : vector<128x8xf32>, vector<8x128xf32>, vector<128x128xf32> -> vector<128x128xf32>
    %c0_5 = arith.constant 0 : index
    %c0_6 = arith.constant 0 : index
    %7 = vector.load %arg8[%c0_5, %c0_6] : memref<16x128xf32, #tpu.memory_space<vmem>>, vector<16x128xf32>
    %c0_7 = arith.constant 0 : index
    %c0_8 = arith.constant 0 : index
    %c0_9 = arith.constant 0 : index
    %8 = vector.load %arg4[%c0_7, %c0_8, %c0_9] : memref<1x16x128xf32, #tpu.memory_space<vmem>>, vector<1x16x128xf32>
    %9 = vector.shape_cast %8 : vector<1x16x128xf32> to vector<16x128xf32>
    %cst_10 = arith.constant dense<0.000000e+00> : vector<16x128xf32>
    %10 = tpu.matmul %9, %6, %cst_10 {dimension_numbers = #tpu.dot_dimension_numbers<[1], [0], [0], [1], [0, 0, 1, 1], [], []>} : vector<16x128xf32>, vector<128x128xf32>, vector<16x128xf32> -> vector<16x128xf32>
    %11 = arith.addf %7, %10 : vector<16x128xf32>
    %c0_11 = arith.constant 0 : index
    %c0_12 = arith.constant 0 : index
    %12 = vector.load %arg8[%c0_11, %c0_12] : memref<16x128xf32, #tpu.memory_space<vmem>>, vector<16x128xf32>
    tpu.vector_store %arg8[%c0_11, %c0_12], %11 {strides = array<i32>} : memref<16x128xf32, #tpu.memory_space<vmem>>, vector<16x128xf32>,
    %c0_i32_13 = arith.constant 0 : i32
    %13 = arith.cmpi eq, %arg2, %c0_i32_13 : i32
    %14 = arith.extui %13 : i1 to i32
    %c0_i32_14 = arith.constant 0 : i32
    %15 = arith.cmpi ne, %14, %c0_i32_14 : i32
    scf.if %15 {
      %c0_15 = arith.constant 0 : index
      %c0_16 = arith.constant 0 : index
      %16 = vector.load %arg8[%c0_15, %c0_16] : memref<16x128xf32, #tpu.memory_space<vmem>>, vector<16x128xf32>
      %c0_17 = arith.constant 0 : index
      %c0_18 = arith.constant 0 : index
      %17 = vector.load %arg6[%c0_17, %c0_18] : memref<1x128xf32, #tpu.memory_space<vmem>>, vector<1x128xf32>
      %18 = vector.broadcast %17 : vector<1x128xf32> to vector<16x128xf32>
      %19 = arith.addf %16, %18 : vector<16x128xf32>
      %c0_19 = arith.constant 0 : index
      %c0_20 = arith.constant 0 : index
      %c0_21 = arith.constant 0 : index
      %20 = vector.load %arg7[%c0_19, %c0_20, %c0_21] : memref<1x16x128xf32, #tpu.memory_space<vmem>>, vector<1x16x128xf32>
      %21 = vector.shape_cast %20 : vector<1x16x128xf32> to vector<16x128xf32>
      %22 = vector.shape_cast %19 : vector<16x128xf32> to vector<1x16x128xf32>
      tpu.vector_store %arg7[%c0_19, %c0_20, %c0_21], %22 {strides = array<i32>} : memref<1x16x128xf32, #tpu.memory_space<vmem>>, vector<1x16x128xf32>,
    } else {
    }
    return
  }
  func.func @transform_0(%arg0: i32, %arg1: i32, %arg2: i32) -> (i32, i32, i32) {
    %c0_i32 = arith.constant 0 : i32
    %c0_i32_0 = arith.constant 0 : i32
    return %arg0, %arg2, %c0_i32 : i32, i32, i32
  }
  func.func @transform_1(%arg0: i32, %arg1: i32, %arg2: i32) -> (i32, i32, i32) {
    %c0_i32 = arith.constant 0 : i32
    %c0_i32_0 = arith.constant 0 : i32
    return %c0_i32, %arg1, %arg2 : i32, i32, i32
  }
  func.func @transform_2(%arg0: i32, %arg1: i32, %arg2: i32) -> (i32, i32) {
    %c0_i32 = arith.constant 0 : i32
    %c0_i32_0 = arith.constant 0 : i32
    %c0_i32_1 = arith.constant 0 : i32
    return %c0_i32, %c0_i32_0 : i32, i32
  }
  func.func @transform_3(%arg0: i32, %arg1: i32, %arg2: i32) -> (i32, i32) {
    %c0_i32 = arith.constant 0 : i32
    %c0_i32_0 = arith.constant 0 : i32
    %c0_i32_1 = arith.constant 0 : i32
    return %c0_i32, %c0_i32_0 : i32, i32
  }
  func.func @transform_4(%arg0: i32, %arg1: i32, %arg2: i32) -> (i32, i32, i32) {
    %c0_i32 = arith.constant 0 : i32
    %c0_i32_0 = arith.constant 0 : i32
    return %arg0, %arg1, %c0_i32 : i32, i32, i32
  }
}

</mosaic_0001>

<bundles_post_ra>
// kernel: tpu_custom_call.1
= control target key start
LH: loop header
LB: loop body
LE: loop exit
PB: predicated region body
PF: predicated region fallthrough
CT: control target
= control target key end

     0   :  { %9 = vsyncpa [#allocation4], 0  ;;  %s1151_s0 = inlined_call_operand.vmem [shape: f32[2,128,8], index: 0, kind: input, shape index: {}]   ;;  %s1152_s1 = inlined_call_operand.vmem [shape: f32[1,16,128], index: 1, kind: input, shape index: {}]   ;;  %s1153_s2 = inlined_call_operand.vmem [shape: f32[8,128], index: 2, kind: input, shape index: {}]   ;;  %s1154_s3 = inlined_call_operand.vmem [shape: f32[1,128], index: 3, kind: input, shape index: {}]   ;;  %s1155_s4 = inlined_call_operand.hbm [shape: f32[2,16,128], index: 4, kind: output, shape index: {}]  }
   0x1   :  { %11 = vsyncpa [#allocation4 + $0x1], 0  ;;  %s991_s15 = smov 0   ;;  %s993_s16 = smov 0  }
   0x2   :  { %s995_s17 = smov 0   ;;  %s997_s18 = smov 0  }
   0x3   :  { %s999_s19 = smov 0   ;;  %s1001_s20 = smov 0  }
   0x4 LB: > { %s699_s21 = sadd.s32 4294967295, %s961_s20   ;;  %s700_s22 = sadd.s32 4294967294, %s961_s20   ;;  %s961_s20 = sphi %s1001_s20, %s17_s20   ;;  %s957_s19 = sphi %s999_s19, %s1162_s19   ;;  %s953_s18 = sphi %s997_s18, %s1161_s18   ;;  %s949_s17 = sphi %s995_s17, %s1160_s17   ;;  %s945_s16 = sphi %s993_s16, %s1159_s16   ;;  %s941_s15 = sphi %s991_s15, %s1158_s15  }
   0x5   : > { %s36_s23 = sadd.s32 1, %s957_s19  ;;  %s143_s24 = sadd.s32 1, %s949_s17 }
   0x6   : > { %p38_p0 = scmp.ge.s32.totalorder %s36_s23, 2  ;;  %p153_p1 = scmp.ne.s32.totalorder %s949_s17, %s945_s16 }
   0x7   : > { %p154_p2 = scmp.eq.s32.totalorder %s699_s21, 1  ;;  %p159_p3 = scmp.ne.s32.totalorder %s945_s16, %s941_s15 }
   0x8   : > { %s1164_s23 = smov (%p38_p0, %s36_s23), 0  ;;  %p160_p5 = scmp.eq.s32.totalorder %s700_s22, 1 }
   0x9   : > { %p1031_p4 = por %p154_p2, %p153_p1  ;;  %s138_s26 = ssub.s32 %s957_s19, %s1164_s23 }
   0xa   : > { %p704_p6 = scmp.ge.s32.totalorder %s961_s20, 1  ;;  %p141_p7 = scmp.eq.s32.totalorder %s138_s26, 0 }
   0xb   : > { %p1038_p8 = por %p160_p5, %p159_p3  ;;  %p209_p9 = scmp.lt.s32.totalorder %s961_s20, 3 }
   0xc   : > { %s1044_s28 = scalar_select %p141_p7, %s949_s17, %s143_s24  }
   0xd   : > { %p210_p10 = pnand %p704_p6, %p209_p9 }
   0xe   : > { %p248_p11 = scmp.lt.s32.totalorder (!%p210_p10), %s953_s18, 1  ;;  %s244_s14 = sand.u32 (!%p210_p10), 1, %s945_s16  }
   0xf   : > { %213 = sbr.rel (%p210_p10) target bundleno = 490 (0x1ea), region = 36  ;;  %s705_s21 = sshll.u32 (!%p210_p10), %s244_s14, 4 }
  0x10   : > { %s246_s26 = scalar_lea.vmem (!%p210_p10), [#allocation3], %s705_s21  ;;  %s731_s30 = sshll.u32 (!%p210_p10), %s953_s18, 8 }
  0x11   : > { %s599_s29 = sshll.u32 (!%p210_p10), %s246_s26, 4  ;;  %s1104_s7 = scalar_lea.hbm (!%p210_p10), %s1155_s4, %s731_s30  ;;  %s1099_s29 = int_to_ptr.vmem [resolvable:$true] %s599_s29 }
  0x12   : > { %s1106_s8 = scalar_lea.sflag (!%p210_p10), [#allocation4], %s244_s14 }
  0x14   : > { %v289_v0 = vld [vmem:[%s1153_s2] sm:$0xff]  ;;  %s249_s5 = scalar_select %p248_p11, %s953_s18, 1  ;;  %vm290_vm0 = vcmask 64512   ;;  %v487_v34 = vld [vmem:[%s1152_s1 + $0x8] sm:$0xff] }
  0x15   : > { %767 = vmatprep.subr.mxu0 %v289_v0  ;;  %v486_v17 = vld [vmem:[%s1152_s1] sm:$0xff]  ;;  %s963_s18 = smov [#allocation3]  }
  0x16   : > { %768 = vmatpush3.msra.mxu0 %v289_v0  ;;  %s730_s6 = sshll.u32 %s249_s5, 7  ;;  %825 = vmatprep.mubr.f32.mxu1 %v486_v17  ;;  %v724_v35 = vld [vmem:[%s1154_s3] ss:$0 sm:$0xff]  ;;  %s889_s10 = sshll.u32 %s963_s18, 4  ;;  %s890_s10 = int_to_ptr.vmem [resolvable:$false] %s889_s10 }
  0x17   : > { %s1054_s9 = scalar_lea.vmem %s1151_s0, %s730_s6  ;;  %s891_s11 = scalar_lea.vmem %s890_s10, 512 }
  0x18   : > { %v273_v1 = vld [vmem:[%s1054_s9] sm:$0xff]  ;;  %v274_v2 = vld [vmem:[%s1054_s9 + $0x8] sm:$0xff]  ;;  %v275_v3 = vld [vmem:[%s1054_s9 + $0x10] sm:$0xff]  ;;  %p892_p1 = scmp.lt.s32.totalorder %s1099_s29, %s890_s10 }
  0x19   : > { %769 = vmatprep.mubr.msk.f32.mxu0 %vm290_vm0, %v273_v1  ;;  %v276_v4 = vld [vmem:[%s1054_s9 + $0x18] sm:$0xff]  ;;  %v277_v5 = vld [vmem:[%s1054_s9 + $0x20] sm:$0xff]  ;;  %v278_v6 = vld [vmem:[%s1054_s9 + $0x28] sm:$0xff] }
  0x1a   : > { %770 = vmatmul.mubr.msk.f32.vlgmr.msra.gmra.mxu0 %vm290_vm0, %v274_v2  ;;  %v279_v7 = vld [vmem:[%s1054_s9 + $0x30] sm:$0xff]  ;;  %v280_v8 = vld [vmem:[%s1054_s9 + $0x38] sm:$0xff]  ;;  %v281_v9 = vld [vmem:[%s1054_s9 + $0x40] sm:$0xff] }
  0x1b   : > { %772 = vmatprep.mubr.msk.f32.mxu0 %vm290_vm0, %v275_v3  ;;  %v282_v10 = vld [vmem:[%s1054_s9 + $0x48] sm:$0xff]  ;;  %v283_v11 = vld [vmem:[%s1054_s9 + $0x50] sm:$0xff]  ;;  %v284_v12 = vld [vmem:[%s1054_s9 + $0x58] sm:$0xff] }
  0x1c   : > { %v285_v13 = vld [vmem:[%s1054_s9 + $0x60] sm:$0xff]  ;;  %v286_v14 = vld [vmem:[%s1054_s9 + $0x68] sm:$0xff]  ;;  %v287_v15 = vld [vmem:[%s1054_s9 + $0x70] sm:$0xff] }
  0x1d   : > { %v288_v16 = vld [vmem:[%s1054_s9 + $0x78] sm:$0xff]  ;;  %s885_s9 = scalar_lea.vmem %s1099_s29, 256 }
  0x1e   : > { %773 = vmatmul.mubr.msk.f32.gmra.mxu0 %vm290_vm0, %v276_v4  ;;  %p886_p12 = scmp.ne.s32.totalorder %s1099_s29, %s885_s9  ;;  %p893_p2 = scmp.lt.s32.totalorder %s891_s11, %s885_s9 }
  0x1f   : > { %775 = vmatprep.mubr.msk.f32.mxu0 %vm290_vm0, %v277_v5 }
  0x20   : > { %p887_p13 = pnand %p886_p12, %p1031_p4  ;;  %p894_p3 = por %p893_p2, %p892_p1 }
  0x22   : > { %776 = vmatmul.mubr.msk.f32.gmra.mxu0 %vm290_vm0, %v278_v6  ;;  %p888_p0 = pneg %p887_p13 }
  0x23   : > { %778 = vmatprep.mubr.msk.f32.mxu0 %vm290_vm0, %v279_v7 }
  0x24   : > { %p895_p5 = pnand %p894_p3, %p888_p0 }
  0x26   : > { %779 = vmatmul.mubr.msk.f32.gmra.mxu0 %vm290_vm0, %v280_v8 }
  0x27   : > { %781 = vmatprep.mubr.msk.f32.mxu0 %vm290_vm0, %v281_v9 }
  0x2a   : > { %782 = vmatmul.mubr.msk.f32.gmra.mxu0 %vm290_vm0, %v282_v10 }
  0x2b   : > { %784 = vmatprep.mubr.msk.f32.mxu0 %vm290_vm0, %v283_v11 }
  0x2e   : > { %785 = vmatmul.mubr.msk.f32.gmra.mxu0 %vm290_vm0, %v284_v12 }
  0x2f   : > { %787 = vmatprep.mubr.msk.f32.mxu0 %vm290_vm0, %v285_v13 }
  0x32   : > { %788 = vmatmul.mubr.msk.f32.gmra.mxu0 %vm290_vm0, %v286_v14 }
  0x33   : > { %790 = vmatprep.mubr.msk.f32.mxu0 %vm290_vm0, %v287_v15 }
  0x36   : > { %791 = vmatmul.mubr.msk.f32.gmra.mxu0 %vm290_vm0, %v288_v16 }
  0xda   : > { %v771_v18 = vpop.f32.mrf.mxu0 }
  0xdc   : > { %v405_v19 = vpop.f32.mrf.mxu0 }
  0xde   : > { %v774_v20 = vpop.f32.mrf.mxu0 }
  0xe0   : > { %v415_v21 = vpop.f32.mrf.mxu0 }
  0xe2   : > { %v777_v22 = vpop.f32.mrf.mxu0 }
  0xe4   : > { %v425_v23 = vpop.f32.mrf.mxu0 }
  0xe6   : > { %v780_v24 = vpop.f32.mrf.mxu0 }
  0xe8   : > { %v435_v25 = vpop.f32.mrf.mxu0 }
  0xea   : > { %v783_v26 = vpop.f32.mrf.mxu0 }
  0xec   : > { %v445_v27 = vpop.f32.mrf.mxu0 }
  0xee   : > { %v786_v28 = vpop.f32.mrf.mxu0 }
  0xf0   : > { %v455_v29 = vpop.f32.mrf.mxu0 }
  0xf2   : > { %v789_v30 = vpop.f32.mrf.mxu0 }
  0xf4   : > { %v465_v31 = vpop.f32.mrf.mxu0 }
  0xf6   : > { %v792_v32 = vpop.f32.mrf.mxu0 }
  0xf7   : > { %793 = vmatprep.subr.mxu1 %v792_v32 }
  0xf8   : > { %v475_v33 = vpop.f32.mrf.mxu0  ;;  %794 = vmatpush3.msra.mxu1 %v792_v32 }
  0xf9   : > { %795 = vmatprep.subr.mxu1 %v475_v33 }
  0xfa   : > { %796 = vmatpush3.msra.mxu1 %v475_v33 }
  0xfb   : > { %797 = vmatprep.subr.mxu1 %v789_v30 }
  0xfc   : > { %798 = vmatpush3.msra.mxu1 %v789_v30 }
  0xfd   : > { %799 = vmatprep.subr.mxu1 %v465_v31 }
  0xfe   : > { %800 = vmatpush3.msra.mxu1 %v465_v31 }
  0xff   : > { %801 = vmatprep.subr.mxu1 %v786_v28 }
 0x100   : > { %802 = vmatpush3.msra.mxu1 %v786_v28 }
 0x101   : > { %803 = vmatprep.subr.mxu1 %v455_v29 }
 0x102   : > { %804 = vmatpush3.msra.mxu1 %v455_v29 }
 0x103   : > { %805 = vmatprep.subr.mxu1 %v783_v26 }
 0x104   : > { %806 = vmatpush3.msra.mxu1 %v783_v26 }
 0x105   : > { %807 = vmatprep.subr.mxu1 %v445_v27 }
 0x106   : > { %808 = vmatpush3.msra.mxu1 %v445_v27 }
 0x107   : > { %809 = vmatprep.subr.mxu1 %v780_v24 }
 0x108   : > { %810 = vmatpush3.msra.mxu1 %v780_v24 }
 0x109   : > { %811 = vmatprep.subr.mxu1 %v435_v25 }
 0x10a   : > { %812 = vmatpush3.msra.mxu1 %v435_v25 }
 0x10b   : > { %813 = vmatprep.subr.mxu1 %v777_v22 }
 0x10c   : > { %814 = vmatpush3.msra.mxu1 %v777_v22 }
 0x10d   : > { %815 = vmatprep.subr.mxu1 %v425_v23 }
 0x10e   : > { %816 = vmatpush3.msra.mxu1 %v425_v23 }
 0x10f   : > { %817 = vmatprep.subr.mxu1 %v774_v20 }
 0x110   : > { %818 = vmatpush3.msra.mxu1 %v774_v20 }
 0x111   : > { %819 = vmatprep.subr.mxu1 %v415_v21 }
 0x112   : > { %820 = vmatpush3.msra.mxu1 %v415_v21 }
 0x113   : > { %821 = vmatprep.subr.mxu1 %v771_v18 }
 0x114   : > { %822 = vmatpush3.msra.mxu1 %v771_v18 }
 0x115   : > { %823 = vmatprep.subr.mxu1 %v405_v19 }
 0x116   : > { %824 = vmatpush3.msra.mxu1 %v405_v19 }
 0x117   : > { %826 = vmatmul.mubr.f32.vlgmr.msra.gmra.mxu1 %v487_v34 }
 0x1d7   : > { %v827_v36 = vpop.f32.mrf.mxu1 }
 0x1d8   : > { %v580_v37 = vadd.f32 %v827_v36, %v724_v35 }
 0x1d9   : > { %v554_v38 = vpop.f32.mrf.mxu1 }
 0x1da   : > { %582 = vst [vmem:[%s246_s26 + $0x8] sm:$0xff] %v580_v37  ;;  %v579_v39 = vadd.f32 %v724_v35, %v554_v38 }
 0x1dc   : > { %581 = vst [vmem:[%s246_s26] sm:$0xff] %v579_v39 }
 0x1dd   : > { %898 = shalt.err (!%p895_p5)
}
 0x1de   : > { %s899_s12 = scalar_lea.hbm %s1104_s7, 256  ;;  %s903_s21 = scalar_lea.hbm %s1155_s4, 512 }
 0x1df   : > { %p900_p6 = scmp.ne.s32.totalorder %s1104_s7, %s899_s12  ;;  %p904_p10 = scmp.lt.s32.totalorder %s1104_s7, %s1155_s4 }
 0x1e0   : > { %p905_p11 = scmp.lt.s32.totalorder %s903_s21, %s899_s12 }
 0x1e1   : > { %p901_p7 = pnand %p900_p6, %p1031_p4 }
 0x1e2   : > { %p906_p12 = por %p905_p11, %p904_p10 }
 0x1e3   : > { %p902_p9 = pneg %p901_p7 }
 0x1e5   : > { %p907_p13 = pnand %p906_p12, %p902_p9 }
 0x1e7   : > { %910 = shalt.err (!%p907_p13)
}
 0x1e8   : > { %s964_s26 = smov 128   ;;  %s965_s30 = smov 8  }
 0x1e9   : > { %828 = dma.vmem_to_hbm [thread:$0]  (%p1031_p4), %s1099_s29, 256, %s1104_s7, %s1106_s8, %s964_s26, %s964_s26, %s965_s30  }
 0x1ea PF: > { %p834_p0 = scmp.ge.s32.totalorder %s961_s20, 2  ;;  %s614_s5 = sand.u32 1, %s941_s15  }
 0x1eb   : > { %s615_s6 = scalar_lea.sflag [#allocation4], %s614_s5 }
 0x1ec   : > { %p831_p1 = pnand %p834_p0, %p1038_p8 }
 0x1ee   : > { %p832_p2 = pneg %p831_p1 }
 0x1f0   : > { %936 = dma.done.wait (%p832_p2), %s615_s6, 256  }
 0x1f1   : > { %938 = vsyncadd (%p832_p2), %s615_s6, 4294967040  ;;  %s17_s20 = sadd.s32 1, %s961_s20   ;;  %s1158_s15 = smov %s945_s16 }
 0x1f2   : > { %p14_p3 = scmp.ge.s32.totalorder %s17_s20, 4   ;;  %s1159_s16 = smov %s949_s17 }
 0x1f3   : > { %s1160_s17 = smov %s1044_s28  ;;  %s1161_s18 = smov %s957_s19 }
 0x1f4   : > { %s1162_s19 = smov %s1164_s23  ;;  %16 = sbr.rel (!%p14_p3) target bundleno = 4 (0x4), region = 82 }
 0x1f9   :  { %620 = vsyncpa [#allocation4], 1 }
 0x1fa   :  { %622 = vsyncpa [#allocation4 + $0x1], 1 }

</bundles_post_ra>
